<compile_context>
chip_gen: v7x
topology: tpu7x:2x2x1
jax: 0.10.0
libtpu: 0.0.40
codegen_flags: <defaults>
</compile_context>

<pallas_src>
import functools

import jax
import jax.numpy as jnp
import numpy as np
from jax.experimental import pallas as pl
from jax.experimental.pallas import tpu as pltpu


# --------------------------------- kernels -----------------------------------

def _affine_scale_kernel(x_ref, scale_ref, o_ref):
    # x_ref: (B, C, tile_t)   scale_ref: (1, C, 1)
    # Per-channel scale, broadcast over batch (leading dim) and time (lanes).
    o_ref[...] = (x_ref[...] * scale_ref[...]).astype(o_ref.dtype)


def _affine_scale_drop_kernel(x_ref, scale_ref, mult_ref, o_ref):
    # mult_ref: (B, 1, 1) = keep_mask / keep_prob (stochastic depth, per sample)
    o_ref[...] = (x_ref[...] * scale_ref[...] * mult_ref[...]).astype(o_ref.dtype)


# --------------------------------- wrapper ------------------------------------

def _pick_tile_t(B, C, T, itemsize):
    """Largest lane-dense (multiple of 128) tile along T that divides T and
    keeps the double-buffered in+out blocks well inside scoped VMEM."""
    budget = 4 * 1024 * 1024  # bytes for one x block; ~4x with in+out double buffers
    for cand in (4096, 2048, 1024, 512, 256, 128):
        if T % cand == 0 and B * C * cand * itemsize <= budget:
            return cand
    # Small or ragged T: fall back to a single full block along T.
    return T


def affine_drop_path_forward(x, scale, *, drop_prob=0.0, training=False,
                             drop_mask=None, rng=None):
    """x: (B, C, T); scale: (1, C, 1).  Returns (B, C, T).

    Eval mode (default) == the PyTorch module's forward in .eval():  scale * x.
    Training mode applies stochastic depth with a per-sample keep mask
    (drop_mask, shape (B,1,1) of {0,1}); if drop_mask is None it is drawn from
    `rng` exactly like torch's `keep_prob + rand(...)` then floor.
    """
    B, C, T = x.shape
    scale = scale.astype(x.dtype)

    tile_t = _pick_tile_t(B, C, T, x.dtype.itemsize)
    grid = (T // tile_t,)

    x_spec = pl.BlockSpec((B, C, tile_t), lambda t: (0, 0, t))
    scale_spec = pl.BlockSpec((1, C, 1), lambda t: (0, 0, 0))
    out_shape = jax.ShapeDtypeStruct((B, C, T), x.dtype)
    cparams = pltpu.CompilerParams(dimension_semantics=("parallel",))

    if drop_prob == 0.0 or not training:
        return pl.pallas_call(
            _affine_scale_kernel,
            out_shape=out_shape,
            grid=grid,
            in_specs=[x_spec, scale_spec],
            out_specs=x_spec,
            compiler_params=cparams,
        )(x, scale)

    # Training-mode stochastic depth: per-sample keep mask / keep_prob,
    # fused into the same elementwise kernel.
    keep_prob = 1.0 - drop_prob
    if drop_mask is None:
        if rng is None:
            raise ValueError("training drop_path needs drop_mask or rng")
        drop_mask = jnp.floor(
            keep_prob + jax.random.uniform(rng, (B, 1, 1), dtype=x.dtype))
    mult = drop_mask.astype(x.dtype) / jnp.asarray(keep_prob, x.dtype)  # (B,1,1)
    mult_spec = pl.BlockSpec((B, 1, 1), lambda t: (0, 0, 0))

    return pl.pallas_call(
        _affine_scale_drop_kernel,
        out_shape=out_shape,
        grid=grid,
        in_specs=[x_spec, scale_spec, mult_spec],
        out_specs=x_spec,
        compiler_params=cparams,
    )(x, scale, mult)


# ------------------------------------ main ------------------------------------

if __name__ == "__main__":
    key = jax.random.PRNGKey(0)
    kx, kx2, ks, km = jax.random.split(key, 4)

    # ---- case 1: lane-dense T (multiple of 128), eval mode (== module default) ----
    B, C, T = 2, 32, 256
    x = jax.random.normal(kx, (B, C, T), dtype=jnp.float32)
    # init_scale_value = 1e-4, perturbed so the check is non-trivial
    scale = jnp.full((1, C, 1), 1e-4, dtype=jnp.float32)
    scale = scale * (1.0 + 0.5 * jax.random.normal(ks, (1, C, 1), dtype=jnp.float32))

    out = affine_drop_path_forward(x, scale)
    out = jax.block_until_ready(out)
    ref = scale * x
    np.testing.assert_allclose(np.asarray(out), np.asarray(ref), rtol=1e-6, atol=1e-6)

    # ---- case 2: small / ragged T, training-mode stochastic depth (fixed mask) ----
    B2, C2, T2 = 2, 8, 16
    x2 = jax.random.normal(kx2, (B2, C2, T2), dtype=jnp.float32)
    scale2 = jnp.full((1, C2, 1), 1e-4, dtype=jnp.float32)
    drop_prob = 0.3
    keep_prob = 1.0 - drop_prob
    # same construction torch uses: floor(keep_prob + U[0,1))
    drop_mask = jnp.floor(keep_prob + jax.random.uniform(km, (B2, 1, 1), dtype=jnp.float32))

    out2 = affine_drop_path_forward(x2, scale2, drop_prob=drop_prob, training=True,
                                    drop_mask=drop_mask)
    out2 = jax.block_until_ready(out2)
    ref2 = (scale2 * x2) / keep_prob * drop_mask
    np.testing.assert_allclose(np.asarray(out2), np.asarray(ref2), rtol=1e-6, atol=1e-6)

    print("KERNEL_OK")
</pallas_src>

<mosaic_0001>
module attributes {stable_mosaic.version = 11 : i64} {
  func.func @_affine_scale_kernel(%arg0: i32, %arg1: memref<2x32x256xf32, #tpu.memory_space<vmem>>, %arg2: memref<1x32x1xf32, #tpu.memory_space<vmem>>, %arg3: memref<2x32x256xf32, #tpu.memory_space<vmem>>) attributes {dimension_semantics = [#tpu.dimension_semantics<parallel>], iteration_bounds = array<i64: 1>, scalar_prefetch = 0 : i64, scratch_operands = 0 : i64, tpu.core_type = #tpu.core_type<tc>, window_params = [{transform_indices = @transform_0, window_bounds = array<i64: 2, 32, 256>}, {pipeline_mode = #tpu.pipeline_mode<synchronous>, transform_indices = @transform_1, window_bounds = array<i64: 1, 32, 1>}, {transform_indices = @transform_2, window_bounds = array<i64: 2, 32, 256>}]} {
    %c0 = arith.constant 0 : index
    %c0_0 = arith.constant 0 : index
    %c0_1 = arith.constant 0 : index
    %0 = vector.load %arg1[%c0, %c0_0, %c0_1] : memref<2x32x256xf32, #tpu.memory_space<vmem>>, vector<2x32x256xf32>
    %c0_2 = arith.constant 0 : index
    %c0_3 = arith.constant 0 : index
    %c0_4 = arith.constant 0 : index
    %1 = vector.load %arg2[%c0_2, %c0_3, %c0_4] : memref<1x32x1xf32, #tpu.memory_space<vmem>>, vector<1x32x1xf32>
    %2 = vector.broadcast %1 : vector<1x32x1xf32> to vector<2x32x256xf32>
    %3 = arith.mulf %0, %2 : vector<2x32x256xf32>
    %c0_5 = arith.constant 0 : index
    %c0_6 = arith.constant 0 : index
    %c0_7 = arith.constant 0 : index
    %4 = vector.load %arg3[%c0_5, %c0_6, %c0_7] : memref<2x32x256xf32, #tpu.memory_space<vmem>>, vector<2x32x256xf32>
    tpu.vector_store %arg3[%c0_5, %c0_6, %c0_7], %3 {strides = array<i32>} : memref<2x32x256xf32, #tpu.memory_space<vmem>>, vector<2x32x256xf32>,
    return
  }
  func.func @transform_0(%arg0: i32) -> (i32, i32, i32) {
    %c0_i32 = arith.constant 0 : i32
    %c0_i32_0 = arith.constant 0 : i32
    %c0_i32_1 = arith.constant 0 : i32
    return %c0_i32, %c0_i32_0, %arg0 : i32, i32, i32
  }
  func.func @transform_1(%arg0: i32) -> (i32, i32, i32) {
    %c0_i32 = arith.constant 0 : i32
    %c0_i32_0 = arith.constant 0 : i32
    %c0_i32_1 = arith.constant 0 : i32
    %c0_i32_2 = arith.constant 0 : i32
    return %c0_i32, %c0_i32_0, %c0_i32_1 : i32, i32, i32
  }
  func.func @transform_2(%arg0: i32) -> (i32, i32, i32) {
    %c0_i32 = arith.constant 0 : i32
    %c0_i32_0 = arith.constant 0 : i32
    %c0_i32_1 = arith.constant 0 : i32
    return %c0_i32, %c0_i32_0, %arg0 : i32, i32, i32
  }
}

</mosaic_0001>

<bundles_post_ra>
// kernel: tpu_custom_call.1
= control target key start
LH: loop header
LB: loop body
LE: loop exit
PB: predicated region body
PF: predicated region fallthrough
CT: control target
= control target key end

     0   :  { %7 = vsyncpa [#allocation3], 0  ;;  %s232_s0 = inlined_call_operand.hbm [shape: f32[2,32,256], index: 0, kind: input, shape index: {}]   ;;  %s233_s1 = inlined_call_operand.vmem [shape: f32[1,32,1], index: 1, kind: input, shape index: {}]   ;;  %s234_s2 = inlined_call_operand.hbm [shape: f32[2,32,256], index: 2, kind: output, shape index: {}]  }
   0x1   :  { %8 = vsyncpa [#allocation4], 0  ;;  %s170_s9 = smov [#allocation2]   ;;  %s122_s13 = scalar_lea.hbm %s232_s0, 2048 }
   0x2   :  { %s14_s10 = sshll.u32 %s170_s9, 4  ;;  %p123_p0 = scmp.ne.s32.totalorder %s232_s0, %s122_s13  ;;  %s15_s10 = int_to_ptr.vmem [resolvable:$true] %s14_s10 }
   0x3   :  { %p126_p1 = scmp.lt.u32.totalorder %s122_s13, %s232_s0 }
   0x5   :  { %p128_p2 = pnand %p126_p1, %p123_p0 }
   0x7   :  { %131 = shalt.err (!%p128_p2)
}
   0x8   :  { %s132_s18 = scalar_lea.vmem %s15_s10, 2048  ;;  %p137_p4 = scmp.lt.s32.totalorder %s15_s10, %s15_s10 }
   0x9   :  { %p133_p3 = scmp.ne.s32.totalorder %s15_s10, %s132_s18  ;;  %p138_p5 = scmp.lt.s32.totalorder %s132_s18, %s132_s18 }
   0xb   :  { %p139_p6 = por %p138_p5, %p137_p4 }
   0xd   :  { %p140_p7 = pnand %p139_p6, %p133_p3 }
   0xf   :  { %143 = shalt.err (!%p140_p7)
}
  0x10   :  { %s171_s19 = smov 256   ;;  %s172_s20 = smov 16  }
  0x11   :  { %20 = dma.hbm_to_vmem [thread:$0]  %s232_s0, 2048, %s15_s10, [#allocation3], %s171_s19, %s171_s19, %s172_s20  }
  0x12   :  { %166 = dma.done.wait [#allocation3], 2048  }
  0x13   :  { %167 = vsyncadd [#allocation3], 4294965248  ;;  %v173_v0 = vmov 0   ;;  %v44_v1 = vld [vmem:[%s233_s1 + $0x10] sm:$0xff]  ;;  %v42_v2 = vld [vmem:[%s233_s1] sm:$0xff] }
  0x14   :  { %121 = vset.pattern.permute.xlu1 %v173_v0  ;;  %120 = vset.pattern.permute.xlu0 %v173_v0  ;;  %v45_v3 = vld [vmem:[%s233_s1 + $0x18] sm:$0xff]  ;;  %v43_v4 = vld [vmem:[%s233_s1 + $0x8] sm:$0xff]  ;;  %v30_v5 = vld [vmem:[#allocation2 + $0x20] sm:$0xff]  ;;  %s174_s1 = smov [#allocation5]  }
  0x15   :  { %58 = vperm.xlu1 %121, %v44_v1   ;;  %48 = vperm.xlu0 %120, %v42_v2   ;;  %v31_v6 = vld [vmem:[#allocation2 + $0x28] sm:$0xff]  ;;  %v38_v7 = vld [vmem:[#allocation2 + $0x60] sm:$0xff]  ;;  %v32_v19 = vld [vmem:[#allocation2 + $0x30] sm:$0xff]  ;;  %s103_s30 = sshll.u32 %s174_s1, 4  ;;  %s104_s30 = int_to_ptr.vmem [resolvable:$true] %s103_s30 }
  0x16   :  { %v39_v8 = vld [vmem:[#allocation2 + $0x68] sm:$0xff]  ;;  %v26_v9 = vld [vmem:[#allocation2] sm:$0xff]  ;;  %v33_v20 = vld [vmem:[#allocation2 + $0x38] sm:$0xff]  ;;  %s144_s3 = scalar_lea.vmem %s104_s30, 2048  ;;  %p149_p9 = scmp.lt.s32.totalorder %s104_s30, %s104_s30 }
  0x17   :  { %v27_v10 = vld [vmem:[#allocation2 + $0x8] sm:$0xff]  ;;  %v34_v11 = vld [vmem:[#allocation2 + $0x40] sm:$0xff]  ;;  %v40_v25 = vld [vmem:[#allocation2 + $0x70] sm:$0xff]  ;;  %p145_p8 = scmp.ne.s32.totalorder %s104_s30, %s144_s3  ;;  %p150_p10 = scmp.lt.s32.totalorder %s144_s3, %s144_s3 }
  0x18   :  { %v35_v12 = vld [vmem:[#allocation2 + $0x48] sm:$0xff]  ;;  %v41_v26 = vld [vmem:[#allocation2 + $0x78] sm:$0xff]  ;;  %v28_v27 = vld [vmem:[#allocation2 + $0x10] sm:$0xff] }
  0x19   :  { %63 = vperm.xlu1 %121, %v45_v3   ;;  %53 = vperm.xlu0 %120, %v43_v4   ;;  %v29_v28 = vld [vmem:[#allocation2 + $0x18] sm:$0xff]  ;;  %v36_v29 = vld [vmem:[#allocation2 + $0x50] sm:$0xff]  ;;  %p151_p11 = por %p150_p10, %p149_p9 }
  0x1a   :  { %v37_v30 = vld [vmem:[#allocation2 + $0x58] sm:$0xff] }
  0x1b   :  { %p152_p12 = pnand %p151_p11, %p145_p8 }
  0x94   :  { %v59_v13 = vpop.permute.xlu1 %58  ;;  %v49_v14 = vpop.permute.xlu0 %48 }
  0x95   :  { %v70_v15 = vmul.f32 %v59_v13, %v30_v5  ;;  %v71_v16 = vmul.f32 %v59_v13, %v31_v6  ;;  %v78_v17 = vmul.f32 %v59_v13, %v38_v7  ;;  %v79_v18 = vmul.f32 %v59_v13, %v39_v8 }
  0x96   :  { %v66_v21 = vmul.f32 %v49_v14, %v26_v9  ;;  %v67_v22 = vmul.f32 %v49_v14, %v27_v10  ;;  %v74_v23 = vmul.f32 %v49_v14, %v34_v11  ;;  %v75_v24 = vmul.f32 %v49_v14, %v35_v12 }
  0x97   :  { %86 = vst [vmem:[#allocation5 + $0x20] sm:$0xff] %v70_v15  ;;  %87 = vst [vmem:[#allocation5 + $0x28] sm:$0xff] %v71_v16 }
  0x98   :  { %94 = vst [vmem:[#allocation5 + $0x60] sm:$0xff] %v78_v17  ;;  %95 = vst [vmem:[#allocation5 + $0x68] sm:$0xff] %v79_v18  ;;  %v64_v31 = vpop.permute.xlu1 %63  ;;  %v54_v32 = vpop.permute.xlu0 %53 }
  0x99   :  { %82 = vst [vmem:[#allocation5] sm:$0xff] %v66_v21  ;;  %83 = vst [vmem:[#allocation5 + $0x8] sm:$0xff] %v67_v22  ;;  %v72_v33 = vmul.f32 %v64_v31, %v32_v19  ;;  %v73_v34 = vmul.f32 %v64_v31, %v33_v20  ;;  %v80_v35 = vmul.f32 %v64_v31, %v40_v25 }
  0x9a   :  { %90 = vst [vmem:[#allocation5 + $0x40] sm:$0xff] %v74_v23  ;;  %91 = vst [vmem:[#allocation5 + $0x48] sm:$0xff] %v75_v24  ;;  %v81_v36 = vmul.f32 %v64_v31, %v41_v26  ;;  %v68_v37 = vmul.f32 %v54_v32, %v28_v27  ;;  %v69_v38 = vmul.f32 %v54_v32, %v29_v28 }
  0x9b   :  { %v76_v39 = vmul.f32 %v54_v32, %v36_v29  ;;  %v77_v40 = vmul.f32 %v54_v32, %v37_v30  ;;  %88 = vst [vmem:[#allocation5 + $0x30] sm:$0xff] %v72_v33  ;;  %89 = vst [vmem:[#allocation5 + $0x38] sm:$0xff] %v73_v34 }
  0x9c   :  { %96 = vst [vmem:[#allocation5 + $0x70] sm:$0xff] %v80_v35  ;;  %97 = vst [vmem:[#allocation5 + $0x78] sm:$0xff] %v81_v36 }
  0x9d   :  { %84 = vst [vmem:[#allocation5 + $0x10] sm:$0xff] %v68_v37  ;;  %85 = vst [vmem:[#allocation5 + $0x18] sm:$0xff] %v69_v38 }
  0x9e   :  { %92 = vst [vmem:[#allocation5 + $0x50] sm:$0xff] %v76_v39  ;;  %93 = vst [vmem:[#allocation5 + $0x58] sm:$0xff] %v77_v40 }
  0x9f   :  { %155 = shalt.err (!%p152_p12)
}
  0xa0   :  { %s156_s6 = scalar_lea.hbm %s234_s2, 2048 }
  0xa1   :  { %p157_p13 = scmp.ne.s32.totalorder %s234_s2, %s156_s6  ;;  %p160_p0 = scmp.lt.u32.totalorder %s156_s6, %s234_s2 }
  0xa3   :  { %p162_p1 = pnand %p160_p0, %p157_p13 }
  0xa5   :  { %165 = shalt.err (!%p162_p1)
}
  0xa6   :  { %109 = dma.vmem_to_hbm [thread:$0]  %s104_s30, 2048, %s234_s2, [#allocation4], %s171_s19, %s171_s19, %s172_s20  }
  0xa7   :  { %168 = dma.done.wait [#allocation4], 2048  }
  0xa8   :  { %169 = vsyncadd [#allocation4], 4294965248 }
  0xa9   :  { %113 = vsyncpa [#allocation3], 1 }
  0xaa   :  { %114 = vsyncpa [#allocation4], 1 }

</bundles_post_ra>
